<compile_context>
chip_gen: v7x
topology: tpu7x:2x2x1
jax: 0.10.0
libtpu: 0.0.40
codegen_flags: <defaults>
</compile_context>

<pallas_src>
import functools

import jax
import jax.numpy as jnp
from jax.experimental import pallas as pl
from jax.experimental.pallas import tpu as pltpu


def _round_up(x: int, m: int) -> int:
    return ((x + m - 1) // m) * m


def qhead_kernel(x_ref, w1_ref, b1_ref, w2_ref, b2_ref, o_ref):
    # fc1: x @ W1^T + b1   (w1_ref is already [input_dims, hidden])
    x = x_ref[...]
    h = jnp.dot(x.astype(w1_ref.dtype), w1_ref[...],
                preferred_element_type=jnp.float32)
    # bias-add + ReLU in f32 (v5e has no bf16 VPU path).
    h = jnp.maximum(h + b1_ref[...].astype(jnp.float32), 0.0)
    # fc2: h @ W2^T + b2   (w2_ref is [hidden, n_actions_padded], lane-dense)
    q = jnp.dot(h.astype(w2_ref.dtype), w2_ref[...],
                preferred_element_type=jnp.float32)
    q = q + b2_ref[...].astype(jnp.float32)
    o_ref[...] = q.astype(o_ref.dtype)


def prepare_qhead_params(w1, b1, w2, b2, *, mxu_dtype=None, lane=128):
    """One-time parameter prep (NOT in the per-step path).

    Takes PyTorch nn.Linear-convention params:
      w1: [hidden, input_dims], b1: [hidden]
      w2: [n_actions, hidden],  b2: [n_actions]
    Returns pre-transposed, lane-padded params + true n_actions.
    """
    w1_t = jnp.transpose(w1)                 # [input_dims, hidden]
    w2_t = jnp.transpose(w2)                 # [hidden, n_actions]
    b1_2d = b1.reshape(1, -1)                # [1, hidden]
    b2_2d = b2.reshape(1, -1)                # [1, n_actions]

    n_actions = w2_t.shape[1]
    n_pad = _round_up(n_actions, lane)       # lane-dense output slab
    if n_pad != n_actions:
        w2_t = jnp.pad(w2_t, ((0, 0), (0, n_pad - n_actions)))
        b2_2d = jnp.pad(b2_2d, ((0, 0), (0, n_pad - n_actions)))

    if mxu_dtype is not None:                # e.g. jnp.bfloat16 on v6e/v7x
        w1_t = w1_t.astype(mxu_dtype)
        w2_t = w2_t.astype(mxu_dtype)

    return w1_t, b1_2d, w2_t, b2_2d, n_actions


@functools.partial(jax.jit, static_argnames=("n_actions", "tile_b"))
def qhead_forward(state, w1_t, b1_2d, w2_t, b2_2d, *, n_actions, tile_b=512):
    """state: [B, input_dims]; params from prepare_qhead_params()."""
    B, input_dims = state.shape
    hidden = w1_t.shape[1]
    n_pad = w2_t.shape[1]
    out_dtype = state.dtype

    # Pick a batch tile: at most tile_b, at least 8, and pad B to a multiple.
    tb = max(8, min(tile_b, _round_up(B, 8)))
    B_pad = _round_up(B, tb)
    if B_pad != B:
        state = jnp.pad(state, ((0, B_pad - B), (0, 0)))

    grid = (pl.cdiv(B_pad, tb),)

    itemsize = jnp.dtype(out_dtype).itemsize
    flops = 2 * B_pad * (input_dims * hidden + hidden * n_pad)
    bytes_accessed = int(
        B_pad * input_dims * itemsize
        + w1_t.size * jnp.dtype(w1_t.dtype).itemsize
        + b1_2d.size * jnp.dtype(b1_2d.dtype).itemsize
        + w2_t.size * jnp.dtype(w2_t.dtype).itemsize
        + b2_2d.size * jnp.dtype(b2_2d.dtype).itemsize
        + B_pad * n_pad * itemsize)

    out = pl.pallas_call(
        qhead_kernel,
        out_shape=jax.ShapeDtypeStruct((B_pad, n_pad), out_dtype),
        grid=grid,
        in_specs=[
            # x: tiled over batch, pipelined.
            pl.BlockSpec((tb, input_dims), lambda i: (i, 0)),
            # Weights/biases: full-extent blocks, VMEM-resident across steps.
            pl.BlockSpec((input_dims, hidden), lambda i: (0, 0)),
            pl.BlockSpec((1, hidden), lambda i: (0, 0)),
            pl.BlockSpec((hidden, n_pad), lambda i: (0, 0)),
            pl.BlockSpec((1, n_pad), lambda i: (0, 0)),
        ],
        out_specs=pl.BlockSpec((tb, n_pad), lambda i: (i, 0)),
        compiler_params=pltpu.CompilerParams(
            dimension_semantics=("parallel",),        # v7x: 2 TCs share batch
            vmem_limit_bytes=64 * 1024 * 1024,
        ),
        cost_estimate=pl.CostEstimate(
            flops=flops, transcendentals=0, bytes_accessed=bytes_accessed),
    )(state, w1_t, b1_2d, w2_t, b2_2d)

    # Strip batch padding and the lane padding on the action axis.
    return out[:B, :n_actions]


def init_qhead_params(key, input_dims, hidden, n_actions, dtype=jnp.float32):
    """Deterministic init mirroring nn.Linear shapes (weight: [out, in])."""
    k1, k2, k3, k4 = jax.random.split(key, 4)
    lim1 = 1.0 / (input_dims ** 0.5)
    lim2 = 1.0 / (hidden ** 0.5)
    w1 = jax.random.uniform(k1, (hidden, input_dims), dtype, -lim1, lim1)
    b1 = jax.random.uniform(k2, (hidden,), dtype, -lim1, lim1)
    w2 = jax.random.uniform(k3, (n_actions, hidden), dtype, -lim2, lim2)
    b2 = jax.random.uniform(k4, (hidden if False else n_actions,), dtype, -lim2, lim2)
    return w1, b1, w2, b2


if __name__ == "__main__":
    # Small shapes consistent with Qhead(input_dims, n_actions, hidden_layer=[H]).
    # Batch large enough that the grid/pipeline is actually exercised.
    batch = 256
    input_dims = 32
    hidden = 128
    n_actions = 8
    tile_b = 128

    key = jax.random.PRNGKey(0)
    k_x, k_p = jax.random.split(key)
    state = jax.random.normal(k_x, (batch, input_dims), jnp.float32)
    w1, b1, w2, b2 = init_qhead_params(k_p, input_dims, hidden, n_actions)

    # Pure-JAX reference (same math as the PyTorch forward).
    ref = jnp.maximum(state @ w1.T + b1, 0.0) @ w2.T + b2

    # --- f32 path (default) ---
    params_f32 = prepare_qhead_params(w1, b1, w2, b2)           # one-time prep
    w1_t, b1_2d, w2_t, b2_2d, n_act = params_f32
    q_values = qhead_forward(state, w1_t, b1_2d, w2_t, b2_2d,
                             n_actions=n_act, tile_b=tile_b)
    q_values = jax.block_until_ready(q_values)
    assert q_values.shape == (batch, n_actions)
    assert jnp.allclose(q_values, ref, atol=1e-5, rtol=1e-5)

    # --- bf16 MXU-operand path (v6e/v7x fast path; f32 accumulation) ---
    params_bf16 = prepare_qhead_params(w1, b1, w2, b2, mxu_dtype=jnp.bfloat16)
    w1_b, b1_b, w2_b, b2_b, _ = params_bf16
    q_bf16 = qhead_forward(state, w1_b, b1_b, w2_b, b2_b,
                           n_actions=n_act, tile_b=tile_b)
    q_bf16 = jax.block_until_ready(q_bf16)
    assert q_bf16.shape == (batch, n_actions)
    assert jnp.allclose(q_bf16, ref, atol=5e-2, rtol=5e-2)

    # TODO(synk): NetworkBase.save_checkpoint/load_checkpoint are file I/O,
    # not part of the forward pass, and are intentionally not implemented.
    print("KERNEL_OK")
</pallas_src>

<mosaic_0001>
module attributes {stable_mosaic.version = 11 : i64} {
  func.func @qhead_kernel(%arg0: i32, %arg1: memref<128x32xf32, #tpu.memory_space<vmem>>, %arg2: memref<32x128xf32, #tpu.memory_space<vmem>>, %arg3: memref<1x128xf32, #tpu.memory_space<vmem>>, %arg4: memref<128x128xf32, #tpu.memory_space<vmem>>, %arg5: memref<1x128xf32, #tpu.memory_space<vmem>>, %arg6: memref<128x128xf32, #tpu.memory_space<vmem>>) attributes {dimension_semantics = [#tpu.dimension_semantics<parallel>], iteration_bounds = array<i64: 2>, scalar_prefetch = 0 : i64, scratch_operands = 0 : i64, tpu.core_type = #tpu.core_type<tc>, window_params = [{transform_indices = @transform_0, window_bounds = array<i64: 128, 32>}, {pipeline_mode = #tpu.pipeline_mode<synchronous>, transform_indices = @transform_1, window_bounds = array<i64: 32, 128>}, {pipeline_mode = #tpu.pipeline_mode<synchronous>, transform_indices = @transform_2, window_bounds = array<i64: 1, 128>}, {pipeline_mode = #tpu.pipeline_mode<synchronous>, transform_indices = @transform_3, window_bounds = array<i64: 128, 128>}, {pipeline_mode = #tpu.pipeline_mode<synchronous>, transform_indices = @transform_4, window_bounds = array<i64: 1, 128>}, {transform_indices = @transform_5, window_bounds = array<i64: 128, 128>}]} {
    %c0 = arith.constant 0 : index
    %c0_0 = arith.constant 0 : index
    %0 = vector.load %arg1[%c0, %c0_0] : memref<128x32xf32, #tpu.memory_space<vmem>>, vector<128x32xf32>
    %c0_1 = arith.constant 0 : index
    %c0_2 = arith.constant 0 : index
    %1 = vector.load %arg2[%c0_1, %c0_2] : memref<32x128xf32, #tpu.memory_space<vmem>>, vector<32x128xf32>
    %cst = arith.constant dense<0.000000e+00> : vector<128x128xf32>
    %2 = tpu.matmul %0, %1, %cst {dimension_numbers = #tpu.dot_dimension_numbers<[1], [0], [0], [1], [0, 0, 1, 1], [], []>} : vector<128x32xf32>, vector<32x128xf32>, vector<128x128xf32> -> vector<128x128xf32>
    %c0_3 = arith.constant 0 : index
    %c0_4 = arith.constant 0 : index
    %3 = vector.load %arg3[%c0_3, %c0_4] : memref<1x128xf32, #tpu.memory_space<vmem>>, vector<1x128xf32>
    %4 = vector.broadcast %3 : vector<1x128xf32> to vector<128x128xf32>
    %5 = arith.addf %2, %4 : vector<128x128xf32>
    %cst_5 = arith.constant 0.000000e+00 : f32
    %6 = vector.broadcast %cst_5 : f32 to vector<128x128xf32>
    %7 = arith.maximumf %5, %6 : vector<128x128xf32>
    %c0_6 = arith.constant 0 : index
    %c0_7 = arith.constant 0 : index
    %8 = vector.load %arg4[%c0_6, %c0_7] : memref<128x128xf32, #tpu.memory_space<vmem>>, vector<128x128xf32>
    %cst_8 = arith.constant dense<0.000000e+00> : vector<128x128xf32>
    %9 = tpu.matmul %7, %8, %cst_8 {dimension_numbers = #tpu.dot_dimension_numbers<[1], [0], [0], [1], [0, 0, 1, 1], [], []>} : vector<128x128xf32>, vector<128x128xf32>, vector<128x128xf32> -> vector<128x128xf32>
    %c0_9 = arith.constant 0 : index
    %c0_10 = arith.constant 0 : index
    %10 = vector.load %arg5[%c0_9, %c0_10] : memref<1x128xf32, #tpu.memory_space<vmem>>, vector<1x128xf32>
    %11 = vector.broadcast %10 : vector<1x128xf32> to vector<128x128xf32>
    %12 = arith.addf %9, %11 : vector<128x128xf32>
    %c0_11 = arith.constant 0 : index
    %c0_12 = arith.constant 0 : index
    %13 = vector.load %arg6[%c0_11, %c0_12] : memref<128x128xf32, #tpu.memory_space<vmem>>, vector<128x128xf32>
    tpu.vector_store %arg6[%c0_11, %c0_12], %12 {strides = array<i32>} : memref<128x128xf32, #tpu.memory_space<vmem>>, vector<128x128xf32>,
    return
  }
  func.func @transform_0(%arg0: i32) -> (i32, i32) {
    %c0_i32 = arith.constant 0 : i32
    %c0_i32_0 = arith.constant 0 : i32
    return %arg0, %c0_i32 : i32, i32
  }
  func.func @transform_1(%arg0: i32) -> (i32, i32) {
    %c0_i32 = arith.constant 0 : i32
    %c0_i32_0 = arith.constant 0 : i32
    %c0_i32_1 = arith.constant 0 : i32
    return %c0_i32, %c0_i32_0 : i32, i32
  }
  func.func @transform_2(%arg0: i32) -> (i32, i32) {
    %c0_i32 = arith.constant 0 : i32
    %c0_i32_0 = arith.constant 0 : i32
    %c0_i32_1 = arith.constant 0 : i32
    return %c0_i32, %c0_i32_0 : i32, i32
  }
  func.func @transform_3(%arg0: i32) -> (i32, i32) {
    %c0_i32 = arith.constant 0 : i32
    %c0_i32_0 = arith.constant 0 : i32
    %c0_i32_1 = arith.constant 0 : i32
    return %c0_i32, %c0_i32_0 : i32, i32
  }
  func.func @transform_4(%arg0: i32) -> (i32, i32) {
    %c0_i32 = arith.constant 0 : i32
    %c0_i32_0 = arith.constant 0 : i32
    %c0_i32_1 = arith.constant 0 : i32
    return %c0_i32, %c0_i32_0 : i32, i32
  }
  func.func @transform_5(%arg0: i32) -> (i32, i32) {
    %c0_i32 = arith.constant 0 : i32
    %c0_i32_0 = arith.constant 0 : i32
    return %arg0, %c0_i32 : i32, i32
  }
}

</mosaic_0001>

<bundles_post_ra>
// kernel: qhead_forward.1
= control target key start
LH: loop header
LB: loop body
LE: loop exit
PB: predicated region body
PF: predicated region fallthrough
CT: control target
= control target key end

     0   :  { %10 = vsyncpa [#allocation3], 0  ;;  %s1775_s0 = inlined_call_operand.hbm [shape: f32[256,32], index: 0, kind: input, shape index: {}]   ;;  %s1776_s1 = inlined_call_operand.hbm [shape: f32[32,128], index: 1, kind: input, shape index: {}]   ;;  %s1777_s2 = inlined_call_operand.hbm [shape: f32[1,128], index: 2, kind: input, shape index: {}]   ;;  %s1778_s3 = inlined_call_operand.hbm [shape: f32[128,128], index: 3, kind: input, shape index: {}]   ;;  %s1779_s4 = inlined_call_operand.hbm [shape: f32[1,128], index: 4, kind: input, shape index: {}]   ;;  %s1780_s5 = inlined_call_operand.hbm [shape: f32[256,128], index: 5, kind: output, shape index: {}]  }
   0x1   :  { %12 = vsyncpa [#allocation3 + $0x1], 0 }
   0x2   :  { %13 = vsyncpa [#allocation6], 0 }
   0x3   :  { %14 = vsyncpa [#allocation9], 0 }
   0x4   :  { %15 = vsyncpa [#allocation4], 0 }
   0x5   :  { %17 = vsyncpa [#allocation4 + $0x1], 0  ;;  %s1432_s18 = smov 0   ;;  %s1434_s19 = smov 0  }
   0x6   :  { %s1436_s20 = smov 0   ;;  %s1438_s21 = smov 0  }
   0x7 LB: > { %s1453_s22 = sadd.s32 4294967295, %s1390_s21   ;;  %s845_s23 = sadd.s32 4294967294, %s1390_s21   ;;  %s1390_s21 = sphi %s1438_s21, %s1803_s21   ;;  %s1386_s20 = sphi %s1436_s20, %s1802_s20   ;;  %s1382_s19 = sphi %s1434_s19, %s1801_s19   ;;  %s1378_s18 = sphi %s1432_s18, %s1800_s18  }
   0x8   : > { %p43_p0 = scmp.ne.s32.totalorder %s1382_s19, %s1378_s18  ;;  %p1781_p1 = scmp.eq.s32.totalorder %s1453_s22, 0 }
   0x9   : > { %p157_p3 = scmp.eq.s32.totalorder %s845_s23, 1  ;;  %p846_p5 = scmp.ge.s32.totalorder %s1390_s21, 1 }
   0xa   : > { %p1462_p4 = por %p1781_p1, %p43_p0  ;;  %p164_p7 = scmp.lt.s32.totalorder %s1390_s21, 3 }
   0xb   : > { %p1467_p6 = por %p157_p3, %p43_p0  ;;  %s1392_s27 = smov [#allocation5]  }
   0xc   : > { %s1784_s24 = scalar_select %p1462_p4, 1, 0 }
   0xd   : > { %s1785_s25 = scalar_select %p1467_p6, 1, 0 }
   0xe   : > { %p1472_p8 = pnand %p846_p5, %p164_p7  ;;  %s176_s28 = sshll.u32 %s1392_s27, 4  ;;  %s1476_s28 = int_to_ptr.vmem [resolvable:$true] %s176_s28 }
   0xf   : > { %s1393_s30 = smov [#allocation8]   ;;  %s1394_s7 = smov [#allocation7]  }
  0x10   : > { %s1786_s26 = scalar_select %p1472_p8, 1, 0 }
  0x11   : > { %p1103_p9 = pneg %p1472_p8  ;;  %s200_s6 = sshll.u32 %s1393_s30, 4  ;;  %s1487_s6 = int_to_ptr.vmem [resolvable:$true] %s200_s6 }
  0x12   : > { %s1489_s8 = sshll.u32 %s1394_s7, 4  ;;  %s1174_s11 = scalar_lea.hbm %s1776_s1, 512  ;;  %s191_s8 = int_to_ptr.vmem [resolvable:$true] %s1489_s8 }
  0x13   : > { %p1483_p11 = pnand %p1103_p9, %p1781_p1  ;;  %p1175_p12 = scmp.ne.s32.totalorder %s1776_s1, %s1174_s11 }
  0x14   : > { %p1181_p5 = scmp.lt.u32.totalorder %s1174_s11, %s1776_s1 }
  0x15   : > { %p1499_p13 = pneg %p1483_p11 }
  0x17   : > { %p1177_p0 = pnand %p1499_p13, %p1175_p12 }
  0x19   : > { %p1178_p3 = pneg %p1177_p0 }
  0x1b   : > { %p1183_p7 = pnand %p1181_p5, %p1178_p3 }
  0x1d   : > { %1186 = shalt.err (!%p1183_p7)
}
  0x1e   : > { %s1187_s17 = scalar_lea.vmem %s1476_s28, 512  ;;  %p1195_p2 = scmp.lt.s32.totalorder %s1476_s28, %s1476_s28 }
  0x1f   : > { %p1188_p9 = scmp.ne.s32.totalorder %s1476_s28, %s1187_s17  ;;  %p1196_p6 = scmp.lt.s32.totalorder %s1187_s17, %s1187_s17 }
  0x21   : > { %p1190_p10 = pnand %p1188_p9, %p1499_p13  ;;  %p1197_p12 = por %p1196_p6, %p1195_p2 }
  0x23   : > { %p1191_p1 = pneg %p1190_p10 }
  0x25   : > { %p1198_p0 = pnand %p1197_p12, %p1191_p1 }
  0x27   : > { %1201 = shalt.err (!%p1198_p0)
}
  0x28   : > { %s1395_s23 = smov 128   ;;  %s1396_s27 = smov 8  }
  0x29   : > { %1106 = dma.hbm_to_vmem [thread:$0]  (!%p1483_p11), %s1776_s1, 512, %s1476_s28, [#allocation6], %s1395_s23, %s1395_s23, %s1396_s27  }
  0x2a   : > { %s1202_s11 = scalar_lea.hbm %s1778_s3, 2048 }
  0x2b   : > { %p1203_p1 = scmp.ne.s32.totalorder %s1778_s3, %s1202_s11  ;;  %p1209_p10 = scmp.lt.u32.totalorder %s1202_s11, %s1778_s3 }
  0x2d   : > { %p1205_p2 = pnand %p1203_p1, %p1499_p13 }
  0x2f   : > { %p1206_p6 = pneg %p1205_p2 }
  0x31   : > { %p1211_p3 = pnand %p1209_p10, %p1206_p6 }
  0x33   : > { %1214 = shalt.err (!%p1211_p3)
}
  0x34   : > { %s1215_s28 = scalar_lea.vmem %s1487_s6, 2048  ;;  %p1223_p12 = scmp.lt.s32.totalorder %s1487_s6, %s1487_s6 }
  0x35   : > { %p1216_p5 = scmp.ne.s32.totalorder %s1487_s6, %s1215_s28  ;;  %p1224_p0 = scmp.lt.s32.totalorder %s1215_s28, %s1215_s28 }
  0x37   : > { %p1218_p7 = pnand %p1216_p5, %p1499_p13  ;;  %p1225_p1 = por %p1224_p0, %p1223_p12 }
  0x39   : > { %p1219_p9 = pneg %p1218_p7 }
  0x3b   : > { %p1226_p2 = pnand %p1225_p1, %p1219_p9 }
  0x3d   : > { %1229 = shalt.err (!%p1226_p2)
}
  0x3e   : > { %1112 = dma.hbm_to_vmem [thread:$0]  (!%p1483_p11), %s1778_s3, 2048, %s1487_s6, [#allocation9], %s1395_s23, %s1395_s23, %s1396_s27  }
  0x3f   : > { %s1230_s10 = scalar_lea.hbm %s1777_s2, 16 }
  0x40   : > { %p1231_p6 = scmp.ne.s32.totalorder %s1777_s2, %s1230_s10  ;;  %p1237_p5 = scmp.lt.u32.totalorder %s1230_s10, %s1777_s2 }
  0x42   : > { %p1233_p10 = pnand %p1231_p6, %p1499_p13 }
  0x44   : > { %p1234_p3 = pneg %p1233_p10 }
  0x46   : > { %p1239_p7 = pnand %p1237_p5, %p1234_p3 }
  0x48   : > { %1242 = shalt.err (!%p1239_p7)
}
  0x49   : > { %s1243_s16 = scalar_lea.vmem %s191_s8, 16  ;;  %s1250_s6 = scalar_lea.vmem %s191_s8, 32 }
  0x4a   : > { %p1244_p9 = scmp.ne.s32.totalorder %s191_s8, %s1243_s16  ;;  %p1251_p1 = scmp.lt.s32.totalorder %s191_s8, %s191_s8 }
  0x4b   : > { %p1252_p2 = scmp.lt.s32.totalorder %s1250_s6, %s1243_s16 }
  0x4c   : > { %p1246_p12 = pnand %p1244_p9, %p1499_p13 }
  0x4d   : > { %p1253_p4 = por %p1252_p2, %p1251_p1 }
  0x4e   : > { %p1247_p0 = pneg %p1246_p12 }
  0x50   : > { %p1254_p8 = pnand %p1253_p4, %p1247_p0 }
  0x52   : > { %1257 = shalt.err (!%p1254_p8)
}
  0x53   : > { %1109 = dma.hbm_to_vmem [thread:$0]  (!%p1483_p11), %s1777_s2, 16, %s191_s8, [#allocation6]  }
  0x54   : > { %s1397_s30 = smov [#allocation10]   ;;  %s1258_s11 = scalar_lea.hbm %s1779_s4, 16 }
  0x55   : > { %s214_s7 = sshll.u32 %s1397_s30, 4  ;;  %p1259_p6 = scmp.ne.s32.totalorder %s1779_s4, %s1258_s11  ;;  %s215_s7 = int_to_ptr.vmem [resolvable:$true] %s214_s7 }
  0x56   : > { %p1265_p10 = scmp.lt.u32.totalorder %s1258_s11, %s1779_s4 }
  0x57   : > { %p1261_p4 = pnand %p1259_p6, %p1499_p13 }
  0x59   : > { %p1262_p8 = pneg %p1261_p4 }
  0x5b   : > { %p1267_p3 = pnand %p1265_p10, %p1262_p8 }
  0x5d   : > { %1270 = shalt.err (!%p1267_p3)
}
  0x5e   : > { %s1271_s8 = scalar_lea.vmem %s215_s7, 16  ;;  %s1278_s6 = scalar_lea.vmem %s215_s7, 32 }
  0x5f   : > { %p1272_p5 = scmp.ne.s32.totalorder %s215_s7, %s1271_s8  ;;  %p1279_p12 = scmp.lt.s32.totalorder %s215_s7, %s215_s7 }
  0x60   : > { %p1280_p0 = scmp.lt.s32.totalorder %s1278_s6, %s1271_s8 }
  0x61   : > { %p1274_p7 = pnand %p1272_p5, %p1499_p13 }
  0x62   : > { %p1281_p1 = por %p1280_p0, %p1279_p12 }
  0x63   : > { %p1275_p9 = pneg %p1274_p7 }
  0x65   : > { %p1282_p2 = pnand %p1281_p1, %p1275_p9 }
  0x67   : > { %1285 = shalt.err (!%p1282_p2)
}
  0x68   : > { %1115 = dma.hbm_to_vmem [thread:$0]  (!%p1483_p11), %s1779_s4, 16, %s215_s7, [#allocation9]  }
  0x69   : > { %s1587_s14 = sadd.s32 1, %s1390_s21   ;;  %s30_s30 = sadd.s32 1, %s1386_s20 }
  0x6a   : > { %s27_s29 = ssub.s32 %s1390_s21, %s1587_s14  ;;  %p37_p13 = scmp.ne.s32.totalorder %s1386_s20, %s1382_s19 }
  0x6b   : > { %p28_p6 = scmp.eq.s32.totalorder %s27_s29, 0  ;;  %p38_p4 = scmp.eq.s32.totalorder %s1390_s21, 0 }
  0x6c   : > { %p1789_p8 = scmp.eq.s32.totalorder %s1453_s22, 1  ;;  %p1128_p3 = scmp.lt.s32.totalorder %s1390_s21, 2 }
  0x6d   : > { %s1603_s10 = scalar_select %p28_p6, %s1386_s20, %s30_s30  }
  0x6e   : > { %p1597_p10 = por %p1789_p8, %p37_p13  ;;  %p39_p5 = por %p38_p4, %p37_p13 }
  0x6f   : > { %s225_s11 = sand.u32 1, %s1386_s20   ;;  %s885_s7 = sshll.u32 %s1390_s21, 11 }
  0x70   : > { %s852_s12 = sshll.u32 %s225_s11, 7  ;;  %s1610_s16 = scalar_lea.hbm %s1775_s0, %s885_s7 }
  0x71   : > { %s229_s8 = scalar_lea.vmem [#allocation2], %s852_s12  ;;  %p1614_p11 = pnand %p1128_p3, %p39_p5 }
  0x72   : > { %s236_s6 = sshll.u32 %s229_s8, 4  ;;  %s1618_s17 = scalar_lea.sflag [#allocation3], %s225_s11  ;;  %s1612_s6 = int_to_ptr.vmem [resolvable:$true] %s236_s6 }
  0x73   : > { %s1286_s30 = scalar_lea.hbm %s1610_s16, 2048  ;;  %p1288_p9 = pneg %p1614_p11 }
  0x74   : > { %p1287_p7 = scmp.ne.s32.totalorder %s1610_s16, %s1286_s30  ;;  %s1291_s7 = scalar_lea.hbm %s1775_s0, 4096 }
  0x75   : > { %p1292_p1 = scmp.lt.u32.totalorder %s1610_s16, %s1775_s0  ;;  %p1293_p2 = scmp.lt.u32.totalorder %s1291_s7, %s1286_s30 }
  0x76   : > { %p1289_p12 = pnand %p1288_p9, %p1287_p7  ;;  %p1295_p6 = scmp.lt.u32.totalorder %s1286_s30, %s1610_s16 }
  0x77   : > { %p1294_p13 = por %p1293_p2, %p1292_p1 }
  0x78   : > { %p1290_p0 = pneg %p1289_p12 }
  0x79   : > { %p1296_p4 = por %p1295_p6, %p1294_p13 }
  0x7b   : > { %p1297_p8 = pnand %p1296_p4, %p1290_p0 }
  0x7d   : > { %1300 = shalt.err (!%p1297_p8)
}
  0x7e   : > { %s1301_s11 = scalar_lea.vmem %s1612_s6, 2048  ;;  %s1398_s8 = smov [#allocation2]  }
  0x7f   : > { %p1302_p3 = scmp.ne.s32.totalorder %s1612_s6, %s1301_s11  ;;  %s1306_s29 = sshll.u32 %s1398_s8, 4  ;;  %s1307_s29 = int_to_ptr.vmem [resolvable:$false] %s1306_s29 }
  0x80   : > { %s1308_s12 = scalar_lea.vmem %s1307_s29, 4096  ;;  %p1309_p12 = scmp.lt.s32.totalorder %s1612_s6, %s1307_s29 }
  0x81   : > { %p1304_p5 = pnand %p1302_p3, %p1288_p9  ;;  %p1310_p1 = scmp.lt.s32.totalorder %s1308_s12, %s1301_s11 }
  0x83   : > { %p1305_p7 = pneg %p1304_p5  ;;  %p1311_p2 = por %p1310_p1, %p1309_p12 }
  0x85   : > { %p1312_p13 = pnand %p1311_p2, %p1305_p7 }
  0x87   : > { %1315 = shalt.err (!%p1312_p13)
}
  0x88   : > { %1119 = dma.hbm_to_vmem [thread:$0]  (!%p1614_p11), %s1610_s16, 2048, %s1612_s6, %s1618_s17, %s1395_s23, %s1395_s23, %s1396_s27  }
  0x89   : > { %p1792_p9 = scmp.ne.s32.totalorder %s1786_s26, 0 }
  0x8a   : > { %s1652_s30 = sand.u32 (!%p1792_p9), 1, %s1382_s19   ;;  %p1793_p0 = scmp.ne.s32.totalorder (!%p1792_p9), %s1784_s24, 0 }
  0x8b   : > { %248 = sbr.rel (%p1792_p9) target bundleno = 641 (0x281), region = 40  ;;  %s856_s7 = sshll.u32 (!%p1792_p9), %s1652_s30, 7 }
  0x8c   : > { %s251_s13 = scalar_lea.sflag (!%p1792_p9), [#allocation3], %s1652_s30  ;;  %s1658_s28 = scalar_lea.vmem (!%p1792_p9), [#allocation2], %s856_s7 }
  0x92   : > { %1361 = dma.done.wait (%p1793_p0), %s251_s13, 2048  }
  0x93   : > { %1363 = vsyncadd (%p1793_p0), %s251_s13, 4294965248  ;;  %p1794_p11 = scmp.eq.s32.totalorder %s1453_s22, 0 }
  0x95   : > { %1365 = dma.done.wait (%p1794_p11), [#allocation6], 528   ;;  %p1795_p6 = pmov %p1794_p11 }
  0x97   : > { %1367 = vsyncadd (%p1795_p6), [#allocation6], 4294966768  ;;  %p1796_p4 = pmov %p1795_p6 }
  0x99   : > { %1369 = dma.done.wait (%p1796_p4), [#allocation9], 2064   ;;  %p1797_p8 = pmov %p1796_p4 }
  0x9a   : > { %vm326_vm0 = vcmask 261120   ;;  %v315_v0 = vld [vmem:[#allocation5] sm:$0xff]  ;;  %v316_v1 = vld [vmem:[#allocation5 + $0x8] sm:$0xff]  ;;  %v317_v2 = vld [vmem:[#allocation5 + $0x10] sm:$0xff]  ;;  %s1706_s24 = scalar_lea.vmem [#allocation11], %s856_s7  ;;  %s886_s26 = sshll.u32 %s1453_s22, 11 }
  0x9b   : > { %1371 = vsyncadd (%p1797_p8), [#allocation9], 4294965232  ;;  %v1027_v3 = vpack.c.bf16 %v316_v1, %v315_v0  ;;  %v318_v4 = vld [vmem:[#allocation5 + $0x18] sm:$0xff]  ;;  %v299_v5 = vld [vmem:[%s1658_s28] sm:$0xff]  ;;  %s734_s23 = sshll.u32 %s1706_s24, 4  ;;  %s1727_s6 = scalar_lea.hbm %s1780_s5, %s886_s26  ;;  %s1729_s23 = int_to_ptr.vmem [resolvable:$true] %s734_s23 }
  0x9c   : > { %v1031_v6 = vpack.c.bf16 %v318_v4, %v317_v2  ;;  %947 = vmatprep.mubr.msk.f32.mxu0 %vm326_vm0, %v299_v5  ;;  %v536_v7 = vld [vmem:[#allocation8] sm:$0xff]  ;;  %v537_v8 = vld [vmem:[#allocation8 + $0x8] sm:$0xff]  ;;  %v538_v9 = vld [vmem:[#allocation8 + $0x10] sm:$0xff]  ;;  %s721_s22 = scalar_lea.sflag [#allocation4], %s1652_s30  ;;  %s1316_s17 = scalar_lea.vmem %s1729_s23, 2048 }
  0x9d   : > { %1028 = vmatprep.subr.bf16.mxu0 %v1027_v3  ;;  %v539_v10 = vld [vmem:[#allocation8 + $0x18] sm:$0xff]  ;;  %v300_v11 = vld [vmem:[%s1658_s28 + $0x8] sm:$0xff]  ;;  %v1035_v12 = vpack.c.bf16 %v537_v8, %v536_v7  ;;  %v301_v13 = vld [vmem:[%s1658_s28 + $0x10] sm:$0xff]  ;;  %p1317_p3 = scmp.ne.s32.totalorder %s1729_s23, %s1316_s17  ;;  %s1399_s15 = smov [#allocation11]  }
  0x9e   : > { %1030 = vmatpush3.bf16.msra.mxu0 %v1027_v3  ;;  %v1039_v14 = vpack.c.bf16 %v539_v10, %v538_v9  ;;  %v540_v15 = vld [vmem:[#allocation8 + $0x20] sm:$0xff]  ;;  %v541_v16 = vld [vmem:[#allocation8 + $0x28] sm:$0xff]  ;;  %v302_v17 = vld [vmem:[%s1658_s28 + $0x18] sm:$0xff]  ;;  %s1320_s11 = sshll.u32 %s1399_s15, 4  ;;  %s1321_s11 = int_to_ptr.vmem [resolvable:$false] %s1320_s11 }
  0x9f   : > { %1032 = vmatprep.subr.bf16.mxu0 %v1031_v6  ;;  %1067 = vmatprep.subr.bf16.mxu1 %v1035_v12  ;;  %v303_v18 = vld [vmem:[%s1658_s28 + $0x20] sm:$0xff]  ;;  %v1043_v19 = vpack.c.bf16 %v541_v16, %v540_v15  ;;  %v542_v20 = vld [vmem:[#allocation8 + $0x30] sm:$0xff]  ;;  %v304_v22 = vld [vmem:[%s1658_s28 + $0x28] sm:$0xff]  ;;  %p1318_p5 = pnand %p1317_p3, %p1597_p10  ;;  %s1322_s8 = scalar_lea.vmem %s1321_s11, 4096 }
  0xa0   : > { %1075 = vmatpush3.bf16.msra.mxu1 %v1035_v12  ;;  %v543_v21 = vld [vmem:[#allocation8 + $0x38] sm:$0xff]  ;;  %v305_v23 = vld [vmem:[%s1658_s28 + $0x30] sm:$0xff]  ;;  %v544_v25 = vld [vmem:[#allocation8 + $0x40] sm:$0xff]  ;;  %p1323_p12 = scmp.lt.s32.totalorder %s1729_s23, %s1321_s11  ;;  %p1324_p1 = scmp.lt.s32.totalorder %s1322_s8, %s1316_s17 }
  0xa1   : > { %1068 = vmatprep.subr.bf16.mxu1 %v1039_v14  ;;  %v1047_v24 = vpack.c.bf16 %v543_v21, %v542_v20  ;;  %v545_v26 = vld [vmem:[#allocation8 + $0x48] sm:$0xff]  ;;  %v306_v27 = vld [vmem:[%s1658_s28 + $0x38] sm:$0xff]  ;;  %v307_v28 = vld [vmem:[%s1658_s28 + $0x40] sm:$0xff]  ;;  %p1319_p7 = pneg %p1318_p5 }
  0xa2   : > { %1034 = vmatpush3.bf16.msra.mxu0 %v1031_v6  ;;  %v1051_v29 = vpack.c.bf16 %v545_v26, %v544_v25  ;;  %v546_v30 = vld [vmem:[#allocation8 + $0x50] sm:$0xff]  ;;  %v547_v31 = vld [vmem:[#allocation8 + $0x58] sm:$0xff]  ;;  %v308_v32 = vld [vmem:[%s1658_s28 + $0x48] sm:$0xff]  ;;  %p1325_p2 = por %p1324_p1, %p1323_p12 }
  0xa3   : > { %1036 = vmatprep.subr.bf16.mxu0 %v1035_v12  ;;  %v309_v33 = vld [vmem:[%s1658_s28 + $0x50] sm:$0xff]  ;;  %v1055_v34 = vpack.c.bf16 %v547_v31, %v546_v30  ;;  %v548_v35 = vld [vmem:[#allocation8 + $0x60] sm:$0xff]  ;;  %v310_v37 = vld [vmem:[%s1658_s28 + $0x58] sm:$0xff] }
  0xa4   : > { %1076 = vmatpush3.bf16.msra.mxu1 %v1039_v14  ;;  %v549_v36 = vld [vmem:[#allocation8 + $0x68] sm:$0xff]  ;;  %v311_v38 = vld [vmem:[%s1658_s28 + $0x60] sm:$0xff]  ;;  %v314_v42 = vld [vmem:[%s1658_s28 + $0x78] sm:$0xff]  ;;  %p1326_p13 = pnand %p1325_p2, %p1319_p7 }
  0xa5   : > { %948 = vmatmul.mubr.msk.f32.vlgmr.msra.gmra.mrb[0].mxu0 %vm326_vm0, %v300_v11  ;;  %1069 = vmatprep.subr.bf16.mxu1 %v1043_v19  ;;  %v1059_v39 = vpack.c.bf16 %v549_v36, %v548_v35  ;;  %v312_v40 = vld [vmem:[%s1658_s28 + $0x68] sm:$0xff]  ;;  %v313_v41 = vld [vmem:[%s1658_s28 + $0x70] sm:$0xff]  ;;  %v551_v44 = vld [vmem:[#allocation8 + $0x78] sm:$0xff] }
  0xa6   : > { %950 = vmatprep.mubr.msk.f32.mxu0 %vm326_vm0, %v301_v13  ;;  %1038 = vmatpush3.bf16.msra.mxu0 %v1035_v12  ;;  %v550_v43 = vld [vmem:[#allocation8 + $0x70] sm:$0xff]  ;;  %v862_v46 = vld [vmem:[#allocation7] ss:$0 sm:$0xff]  ;;  %v879_v31 = vld [vmem:[#allocation10] ss:$0 sm:$0xff] }
  0xa7   : > { %1040 = vmatprep.subr.bf16.mxu0 %v1039_v14  ;;  %v1063_v45 = vpack.c.bf16 %v551_v44, %v550_v43 }
  0xa8   : > { %1077 = vmatpush3.bf16.msra.mxu1 %v1043_v19 }
  0xa9   : > { %951 = vmatmul.mubr.msk.f32.gmra.mrb[2].mxu0 %vm326_vm0, %v302_v17  ;;  %1070 = vmatprep.subr.bf16.mxu1 %v1047_v24 }
  0xaa   : > { %953 = vmatprep.mubr.msk.f32.mxu0 %vm326_vm0, %v303_v18  ;;  %1042 = vmatpush3.bf16.msra.mxu0 %v1039_v14 }
  0xab   : > { %1044 = vmatprep.subr.bf16.mxu0 %v1043_v19 }
  0xac   : > { %1078 = vmatpush3.bf16.msra.mxu1 %v1047_v24 }
  0xad   : > { %954 = vmatmul.mubr.msk.f32.gmra.mrb[4].mxu0 %vm326_vm0, %v304_v22  ;;  %1071 = vmatprep.subr.bf16.mxu1 %v1051_v29 }
  0xae   : > { %956 = vmatprep.mubr.msk.f32.mxu0 %vm326_vm0, %v305_v23  ;;  %1046 = vmatpush3.bf16.msra.mxu0 %v1043_v19 }
  0xaf   : > { %1048 = vmatprep.subr.bf16.mxu0 %v1047_v24 }
  0xb0   : > { %1079 = vmatpush3.bf16.msra.mxu1 %v1051_v29 }
  0xb1   : > { %957 = vmatmul.mubr.msk.f32.gmra.mrb[6].mxu0 %vm326_vm0, %v306_v27  ;;  %1072 = vmatprep.subr.bf16.mxu1 %v1055_v34 }
  0xb2   : > { %959 = vmatprep.mubr.msk.f32.mxu0 %vm326_vm0, %v307_v28  ;;  %1050 = vmatpush3.bf16.msra.mxu0 %v1047_v24 }
  0xb3   : > { %1052 = vmatprep.subr.bf16.mxu0 %v1051_v29 }
  0xb4   : > { %1080 = vmatpush3.bf16.msra.mxu1 %v1055_v34 }
  0xb5   : > { %960 = vmatmul.mubr.msk.f32.gmra.mrb[8].mxu0 %vm326_vm0, %v308_v32  ;;  %1073 = vmatprep.subr.bf16.mxu1 %v1059_v39 }
  0xb6   : > { %962 = vmatprep.mubr.msk.f32.mxu0 %vm326_vm0, %v309_v33  ;;  %1054 = vmatpush3.bf16.msra.mxu0 %v1051_v29 }
  0xb7   : > { %1056 = vmatprep.subr.bf16.mxu0 %v1055_v34 }
  0xb8   : > { %1081 = vmatpush3.bf16.msra.mxu1 %v1059_v39 }
  0xb9   : > { %963 = vmatmul.mubr.msk.f32.gmra.mrb[10].mxu0 %vm326_vm0, %v310_v37  ;;  %1074 = vmatprep.subr.bf16.mxu1 %v1063_v45 }
  0xba   : > { %965 = vmatprep.mubr.msk.f32.mxu0 %vm326_vm0, %v311_v38  ;;  %1058 = vmatpush3.bf16.msra.mxu0 %v1055_v34 }
  0xbb   : > { %1060 = vmatprep.subr.bf16.mxu0 %v1059_v39 }
  0xbc   : > { %1082 = vmatpush3.bf16.msra.mxu1 %v1063_v45 }
  0xbd   : > { %966 = vmatmul.mubr.msk.f32.gmra.mrb[12].mxu0 %vm326_vm0, %v312_v40 }
  0xbe   : > { %968 = vmatprep.mubr.msk.f32.mxu0 %vm326_vm0, %v313_v41  ;;  %1062 = vmatpush3.bf16.msra.mxu0 %v1059_v39 }
  0xbf   : > { %1064 = vmatprep.subr.bf16.mxu0 %v1063_v45 }
  0xc1   : > { %969 = vmatmul.mubr.msk.f32.gmra.mrb[14].mxu0 %vm326_vm0, %v314_v42 }
  0xc2   : > { %1066 = vmatpush3.bf16.msra.mxu0 %v1063_v45 }
 0x178   : > { %v949_v47 = vpop.f32.mrb[0].mxu0 }
 0x179   : > { %v447_v48 = vadd.f32 %v949_v47, %v862_v46  ;;  %v441_v49 = vpop.f32.mrb[1].mxu0 }
 0x17a   : > { %v442_v50 = vadd.f32 %v862_v46, %v441_v49 }
 0x17b   : > { %v521_v53 = vmax.f32 %v447_v48, 0.0 }
 0x17c   : > { %v520_v51 = vmax.f32 %v442_v50, 0.0  ;;  %v952_v52 = vpop.f32.mrb[2].mxu0 }
 0x17d   : > { %v457_v54 = vadd.f32 %v952_v52, %v862_v46  ;;  %v451_v55 = vpop.f32.mrb[3].mxu0 }
 0x17e   : > { %v452_v56 = vadd.f32 %v862_v46, %v451_v55  ;;  %1003 = vmatprep.mubr.f32.mxu0 %v520_v51 }
 0x17f   : > { %1004 = vmatmul.mubr.f32.vlgmr.msra.gmra.mrb[16].mxu0 %v521_v53  ;;  %v523_v59 = vmax.f32 %v457_v54, 0.0 }
 0x180   : > { %v522_v57 = vmax.f32 %v452_v56, 0.0  ;;  %v955_v58 = vpop.f32.mrb[4].mxu0 }
 0x181   : > { %v467_v60 = vadd.f32 %v955_v58, %v862_v46  ;;  %v461_v61 = vpop.f32.mrb[5].mxu0 }
 0x182   : > { %v462_v62 = vadd.f32 %v862_v46, %v461_v61  ;;  %1006 = vmatprep.mubr.f32.mxu0 %v522_v57 }
 0x183   : > { %1007 = vmatmul.mubr.f32.gmra.mrb[18].mxu0 %v523_v59  ;;  %v525_v1 = vmax.f32 %v467_v60, 0.0 }
 0x184   : > { %v524_v63 = vmax.f32 %v462_v62, 0.0  ;;  %v958_v0 = vpop.f32.mrb[6].mxu0 }
 0x185   : > { %v477_v2 = vadd.f32 %v958_v0, %v862_v46  ;;  %v471_v3 = vpop.f32.mrb[7].mxu0 }
 0x186   : > { %1009 = vmatprep.mubr.f32.mxu0 %v524_v63  ;;  %v472_v4 = vadd.f32 %v862_v46, %v471_v3 }
 0x187   : > { %1010 = vmatmul.mubr.f32.gmra.mrb[20].mxu0 %v525_v1  ;;  %v527_v7 = vmax.f32 %v477_v2, 0.0 }
 0x188   : > { %v961_v5 = vpop.f32.mrb[8].mxu0  ;;  %v526_v6 = vmax.f32 %v472_v4, 0.0 }
 0x189   : > { %v487_v8 = vadd.f32 %v961_v5, %v862_v46  ;;  %v481_v9 = vpop.f32.mrb[9].mxu0 }
 0x18a   : > { %v482_v10 = vadd.f32 %v862_v46, %v481_v9  ;;  %1012 = vmatprep.mubr.f32.mxu1 %v526_v6 }
 0x18b   : > { %1013 = vmatmul.mubr.f32.vlgmr.msra.gmra.mrb[0].mxu1 %v527_v7  ;;  %v529_v13 = vmax.f32 %v487_v8, 0.0 }
 0x18c   : > { %v528_v11 = vmax.f32 %v482_v10, 0.0  ;;  %v964_v12 = vpop.f32.mrb[10].mxu0 }
 0x18d   : > { %v497_v14 = vadd.f32 %v964_v12, %v862_v46  ;;  %v491_v15 = vpop.f32.mrb[11].mxu0 }
 0x18e   : > { %v492_v16 = vadd.f32 %v862_v46, %v491_v15  ;;  %1015 = vmatprep.mubr.f32.mxu1 %v528_v11 }
 0x18f   : > { %1016 = vmatmul.mubr.f32.gmra.mrb[2].mxu1 %v529_v13  ;;  %v531_v19 = vmax.f32 %v497_v14, 0.0 }
 0x190   : > { %v530_v17 = vmax.f32 %v492_v16, 0.0  ;;  %v967_v18 = vpop.f32.mrb[12].mxu0 }
 0x191   : > { %v507_v20 = vadd.f32 %v967_v18, %v862_v46  ;;  %v501_v21 = vpop.f32.mrb[13].mxu0 }
 0x192   : > { %v502_v22 = vadd.f32 %v862_v46, %v501_v21  ;;  %1018 = vmatprep.mubr.f32.mxu1 %v530_v17 }
 0x193   : > { %1019 = vmatmul.mubr.f32.gmra.mrb[4].mxu1 %v531_v19  ;;  %v533_v25 = vmax.f32 %v507_v20, 0.0 }
 0x194   : > { %v532_v23 = vmax.f32 %v502_v22, 0.0  ;;  %v970_v24 = vpop.f32.mrb[14].mxu0 }
 0x195   : > { %v517_v26 = vadd.f32 %v970_v24, %v862_v46  ;;  %v511_v27 = vpop.f32.mrb[15].mxu0 }
 0x196   : > { %v512_v28 = vadd.f32 %v862_v46, %v511_v27  ;;  %1021 = vmatprep.mubr.f32.mxu1 %v532_v23 }
 0x197   : > { %1022 = vmatmul.mubr.f32.gmra.mrb[6].mxu1 %v533_v25  ;;  %v535_v30 = vmax.f32 %v517_v26, 0.0 }
 0x198   : > { %v534_v29 = vmax.f32 %v512_v28, 0.0 }
 0x19a   : > { %1024 = vmatprep.mubr.f32.mxu1 %v534_v29 }
 0x19b   : > { %1025 = vmatmul.mubr.f32.gmra.mrb[8].mxu1 %v535_v30 }
 0x252   : > { %v1005_v32 = vpop.f32.mrb[16].mxu0 }
 0x253   : > { %v631_v33 = vadd.f32 %v1005_v32, %v879_v31  ;;  %v625_v34 = vpop.f32.mrb[17].mxu0 }
 0x254   : > { %v626_v35 = vadd.f32 %v879_v31, %v625_v34 }
 0x255   : > { %705 = vst [vmem:[%s1706_s24 + $0x8] sm:$0xff] %v631_v33 }
 0x256   : > { %704 = vst [vmem:[%s1706_s24] sm:$0xff] %v626_v35  ;;  %v1008_v36 = vpop.f32.mrb[18].mxu0 }
 0x257   : > { %v641_v37 = vadd.f32 %v1008_v36, %v879_v31  ;;  %v635_v38 = vpop.f32.mrb[19].mxu0 }
 0x258   : > { %v636_v39 = vadd.f32 %v879_v31, %v635_v38 }
 0x259   : > { %707 = vst [vmem:[%s1706_s24 + $0x18] sm:$0xff] %v641_v37 }
 0x25a   : > { %706 = vst [vmem:[%s1706_s24 + $0x10] sm:$0xff] %v636_v39  ;;  %v1011_v40 = vpop.f32.mrb[20].mxu0 }
 0x25b   : > { %v651_v41 = vadd.f32 %v1011_v40, %v879_v31  ;;  %v645_v42 = vpop.f32.mrb[21].mxu0 }
 0x25c   : > { %v646_v43 = vadd.f32 %v879_v31, %v645_v42 }
 0x25d   : > { %709 = vst [vmem:[%s1706_s24 + $0x28] sm:$0xff] %v651_v41 }
 0x25e   : > { %708 = vst [vmem:[%s1706_s24 + $0x20] sm:$0xff] %v646_v43  ;;  %v1014_v44 = vpop.f32.mrb[0].mxu1 }
 0x25f   : > { %v661_v45 = vadd.f32 %v1014_v44, %v879_v31  ;;  %v655_v46 = vpop.f32.mrb[1].mxu1 }
 0x260   : > { %v656_v47 = vadd.f32 %v879_v31, %v655_v46 }
 0x261   : > { %711 = vst [vmem:[%s1706_s24 + $0x38] sm:$0xff] %v661_v45 }
 0x262   : > { %710 = vst [vmem:[%s1706_s24 + $0x30] sm:$0xff] %v656_v47  ;;  %v1017_v48 = vpop.f32.mrb[2].mxu1 }
 0x263   : > { %v671_v49 = vadd.f32 %v1017_v48, %v879_v31  ;;  %v665_v50 = vpop.f32.mrb[3].mxu1 }
 0x264   : > { %v666_v51 = vadd.f32 %v879_v31, %v665_v50 }
 0x265   : > { %713 = vst [vmem:[%s1706_s24 + $0x48] sm:$0xff] %v671_v49 }
 0x266   : > { %712 = vst [vmem:[%s1706_s24 + $0x40] sm:$0xff] %v666_v51  ;;  %v1020_v52 = vpop.f32.mrb[4].mxu1 }
 0x267   : > { %v681_v53 = vadd.f32 %v1020_v52, %v879_v31  ;;  %v675_v54 = vpop.f32.mrb[5].mxu1 }
 0x268   : > { %v676_v55 = vadd.f32 %v879_v31, %v675_v54 }
 0x269   : > { %715 = vst [vmem:[%s1706_s24 + $0x58] sm:$0xff] %v681_v53 }
 0x26a   : > { %714 = vst [vmem:[%s1706_s24 + $0x50] sm:$0xff] %v676_v55  ;;  %v1023_v56 = vpop.f32.mrb[6].mxu1 }
 0x26b   : > { %v691_v57 = vadd.f32 %v1023_v56, %v879_v31  ;;  %v685_v58 = vpop.f32.mrb[7].mxu1 }
 0x26c   : > { %v686_v59 = vadd.f32 %v879_v31, %v685_v58 }
 0x26d   : > { %717 = vst [vmem:[%s1706_s24 + $0x68] sm:$0xff] %v691_v57 }
 0x26e   : > { %716 = vst [vmem:[%s1706_s24 + $0x60] sm:$0xff] %v686_v59  ;;  %v1026_v60 = vpop.f32.mrb[8].mxu1 }
 0x26f   : > { %v701_v61 = vadd.f32 %v1026_v60, %v879_v31  ;;  %v695_v62 = vpop.f32.mrb[9].mxu1 }
 0x270   : > { %v696_v63 = vadd.f32 %v879_v31, %v695_v62 }
 0x271   : > { %719 = vst [vmem:[%s1706_s24 + $0x78] sm:$0xff] %v701_v61 }
 0x272   : > { %718 = vst [vmem:[%s1706_s24 + $0x70] sm:$0xff] %v696_v63 }
 0x273   : > { %1329 = shalt.err (!%p1326_p13)
}
 0x274   : > { %s1330_s29 = scalar_lea.hbm %s1727_s6, 2048  ;;  %s1334_s13 = scalar_lea.hbm %s1780_s5, 4096 }
 0x275   : > { %p1331_p9 = scmp.ne.s32.totalorder %s1727_s6, %s1330_s29  ;;  %p1335_p6 = scmp.lt.u32.totalorder %s1727_s6, %s1780_s5 }
 0x276   : > { %p1336_p4 = scmp.lt.u32.totalorder %s1334_s13, %s1330_s29  ;;  %p1338_p3 = scmp.lt.u32.totalorder %s1330_s29, %s1727_s6 }
 0x277   : > { %p1332_p0 = pnand %p1331_p9, %p1597_p10 }
 0x278   : > { %p1337_p8 = por %p1336_p4, %p1335_p6 }
 0x279   : > { %p1333_p11 = pneg %p1332_p0 }
 0x27a   : > { %p1339_p5 = por %p1338_p3, %p1337_p8 }
 0x27c   : > { %p1340_p7 = pnand %p1339_p5, %p1333_p11 }
 0x27e   : > { %1343 = shalt.err (!%p1340_p7)
}
 0x27f   : > { %s1400_s26 = smov 128   ;;  %s1401_s27 = smov 8  }
 0x280   : > { %1101 = dma.vmem_to_hbm [thread:$0]  (%p1597_p10), %s1729_s23, 2048, %s1727_s6, %s721_s22, %s1400_s26, %s1400_s26, %s1401_s27  }
 0x281 PF: > { %s749_s16 = sand.u32 1, %s1378_s18   ;;  %p1798_p12 = scmp.ne.s32.totalorder %s1785_s25, 0 }
 0x282   : > { %p1799_p1 = scmp.ge.s32.totalorder %s1390_s21, 2  ;;  %s750_s17 = scalar_lea.sflag [#allocation4], %s749_s16 }
 0x284   : > { %p1121_p2 = pnand %p1799_p1, %p1798_p12 }
 0x286   : > { %1373 = dma.done.wait (!%p1121_p2), %s750_s17, 2048  }
 0x287   : > { %1375 = vsyncadd (!%p1121_p2), %s750_s17, 4294965248  ;;  %p20_p13 = scmp.ge.s32.totalorder %s1587_s14, 4   ;;  %s1800_s18 = smov %s1382_s19 }
 0x288   : > { %s1801_s19 = smov %s1386_s20  ;;  %s1802_s20 = smov %s1603_s10 }
 0x289   : > { %s1803_s21 = smov %s1587_s14  ;;  %22 = sbr.rel (!%p20_p13) target bundleno = 7 (0x7), region = 101 }
 0x290   :  { %755 = vsyncpa [#allocation3], 1 }
 0x291   :  { %757 = vsyncpa [#allocation3 + $0x1], 1 }
 0x292   :  { %758 = vsyncpa [#allocation6], 1 }
 0x293   :  { %759 = vsyncpa [#allocation9], 1 }
 0x294   :  { %760 = vsyncpa [#allocation4], 1 }
 0x295   :  { %762 = vsyncpa [#allocation4 + $0x1], 1 }

</bundles_post_ra>
